<compile_context>
chip_gen: v7x
topology: tpu7x:2x2x1
jax: 0.10.0
libtpu: 0.0.40
codegen_flags: <defaults>
</compile_context>

<pallas_src>
import functools

import jax
import jax.numpy as jnp
from jax.experimental import pallas as pl
from jax.experimental.pallas import tpu as pltpu

EMB_DIM = 300        # nn.Embedding(vocab, 300)
CONV_CH = 100        # nn.Conv2d(1, 100, (3, 300), 1, (1, 0))
CONV_CH_PAD = 128    # lane-dense channel count (zero-padded, inert)
KH = 3               # conv kernel height (over the sequence)


def _cnn_kernel(x_ref, wc_ref, bc_ref, o_ref, *, L, Lc, TB):
    # x_ref : (TB*Lc, E)   bf16  flattened embeddings (sequence padded to Lc)
    # wc_ref: (E, KH*Cp)   bf16  conv weights; tap k in columns [k*Cp,(k+1)*Cp)
    # bc_ref: (1, Cp)      f32   conv bias (zero-padded channels)
    # o_ref : (1, TB, Cp)  f32   per-batch-element max-pooled ReLU features
    Cp = CONV_CH_PAD
    M = TB * Lc

    # One MXU matmul covers all KH taps (N = 384 lanes), f32 accumulation.
    y = jnp.dot(x_ref[...], wc_ref[...], preferred_element_type=jnp.float32)
    y0 = y[:, 0 * Cp:1 * Cp]          # tap 0 applied to row i (feeds row i+1)
    y1 = y[:, 1 * Cp:2 * Cp]          # tap 1 applied to row i (feeds row i)
    y2 = y[:, 2 * Cp:3 * Cp]          # tap 2 applied to row i (feeds row i-1)

    # Tap shifts on the f32 output via cheap XLU sublane rotations.
    y0s = pltpu.roll(y0, shift=1, axis=0)        # row r <- y0[r-1]
    y2s = pltpu.roll(y2, shift=M - 1, axis=0)    # row r <- y2[r+1]

    # Back to (TB, Lc, Cp): Lc % 8 == 0, so the split is sublane-tile aligned.
    y1 = y1.reshape(TB, Lc, Cp)
    y0s = y0s.reshape(TB, Lc, Cp)
    y2s = y2s.reshape(TB, Lc, Cp)

    # rows = per-batch-element sequence index; masks kill roll wrap-around and
    # cross-batch leakage, reproducing the conv's zero padding rows exactly.
    rows = jax.lax.broadcasted_iota(jnp.int32, (TB, Lc, Cp), 1)
    conv = (y1 + bc_ref[...]
            + jnp.where(rows == 0, 0.0, y0s)        # zero halo below row 0
            + jnp.where(rows == Lc - 1, 0.0, y2s))  # zero halo above row Lc-1
    act = jnp.maximum(conv, 0.0)                    # F.relu
    if Lc != L:
        # Zero the sequence-alignment pad rows; exact post-ReLU (act >= 0).
        act = jnp.where(rows < L, act, 0.0)
    o_ref[0] = jnp.max(act, axis=1)                 # F.max_pool1d over full seq


def _choose_tb(batch, seq_pad):
    """Batch elements per grid step: fill the MXU M dim while bounding VMEM."""
    row_bytes = EMB_DIM * 2                                    # bf16 row
    vmem_cap = max(1, (8 << 20) // (seq_pad * row_bytes))      # <= ~8 MiB/buffer
    target = max(1, -(-256 // seq_pad))                        # TB*Lc >= 256
    return max(1, min(batch, target, vmem_cap))


def my_cnn_forward(tokens, emb_table, conv_w, conv_b, fc_w, fc_b, *, tb=None):
    """tokens: (B, L) int32. Returns (B, output_size) float32 probabilities."""
    B, L = tokens.shape
    Lc = ((L + 7) // 8) * 8                       # sublane-align the sequence
    if tb is None:
        tb = _choose_tb(B, Lc)
    nb = -(-B // tb)                              # grid length
    b_pad = nb * tb

    # --- glue (plain JAX) ---------------------------------------------------
    # bf16 table -> the gather emits bf16 directly; a single pad handles both
    # sequence alignment and batch padding (one HBM pass, half-width data).
    emb = emb_table.astype(jnp.bfloat16)[tokens]                  # (B, L, E)
    emb = jnp.pad(emb, ((0, b_pad - B), (0, Lc - L), (0, 0)))     # (b_pad, Lc, E)
    x = emb.reshape(b_pad * Lc, EMB_DIM)                          # contiguous

    # conv weight (C, 1, KH, E) -> (E, KH, Cp) -> (E, KH*Cp), bf16; tap k lives
    # in lane-aligned columns [k*Cp, (k+1)*Cp); padded channels are inert zeros.
    w3 = conv_w.reshape(CONV_CH, KH, EMB_DIM)
    wc = jnp.transpose(w3, (2, 1, 0))                             # (E, KH, C)
    wc = jnp.pad(wc, ((0, 0), (0, 0), (0, CONV_CH_PAD - CONV_CH)))
    wc = wc.reshape(EMB_DIM, KH * CONV_CH_PAD).astype(jnp.bfloat16)
    bc = jnp.pad(conv_b.astype(jnp.float32),
                 (0, CONV_CH_PAD - CONV_CH)).reshape(1, CONV_CH_PAD)

    kernel = functools.partial(_cnn_kernel, L=L, Lc=Lc, TB=tb)
    pooled = pl.pallas_call(
        kernel,
        out_shape=jax.ShapeDtypeStruct((nb, tb, CONV_CH_PAD), jnp.float32),
        grid=(nb,),
        in_specs=[
            pl.BlockSpec((tb * Lc, EMB_DIM), lambda b: (b, 0)),
            pl.BlockSpec((EMB_DIM, KH * CONV_CH_PAD), lambda b: (0, 0)),
            pl.BlockSpec((1, CONV_CH_PAD), lambda b: (0, 0)),
        ],
        out_specs=pl.BlockSpec((1, tb, CONV_CH_PAD), lambda b: (b, 0, 0)),
        compiler_params=pltpu.CompilerParams(
            dimension_semantics=("parallel",)),
    )(x, wc, bc)

    # Tiny fc + softmax in f32 XLA on the lane-dense pooled features.
    pooled = pooled.reshape(b_pad, CONV_CH_PAD)[:B, :CONV_CH]     # (B, 100)
    logits = pooled @ fc_w.T.astype(jnp.float32) + fc_b.astype(jnp.float32)
    return jax.nn.softmax(logits, axis=1)


def _reference_forward(tokens, emb_table, conv_w, conv_b, fc_w, fc_b):
    """Pure-JAX f32 reference of my_CNN.forward for a sanity check."""
    B, L = tokens.shape
    emb = emb_table[tokens]                                       # (B, L, E)
    emb_pad = jnp.pad(emb, ((0, 0), (1, 1), (0, 0)))              # (B, L+2, E)
    w = conv_w.reshape(CONV_CH, KH, EMB_DIM)                      # (C, KH, E)
    conv = jnp.zeros((B, L, CONV_CH), jnp.float32)
    for k in range(KH):
        conv = conv + jnp.einsum("ble,ce->blc", emb_pad[:, k:k + L, :], w[:, k, :])
    conv = conv + conv_b[None, None, :]
    act = jnp.maximum(conv, 0.0)
    pooled = jnp.max(act, axis=1)                                 # (B, C)
    logits = pooled @ fc_w.T + fc_b
    return jax.nn.softmax(logits, axis=1)


if __name__ == "__main__":
    # Small, deterministic synthetic setup consistent with the module.
    B, L = 2, 8
    vocab_size = 50
    output_size = 4
    padding_idx = 0

    key = jax.random.PRNGKey(0)
    k_tok, k_emb, k_cw, k_cb, k_fw, k_fb = jax.random.split(key, 6)

    tokens = jax.random.randint(k_tok, (B, L), 0, vocab_size, dtype=jnp.int32)

    emb_table = 0.1 * jax.random.normal(k_emb, (vocab_size, EMB_DIM),
                                        dtype=jnp.float32)
    # padding_idx row is zero, as in nn.Embedding(padding_idx=...)
    emb_table = emb_table.at[padding_idx].set(0.0)

    conv_w = 0.05 * jax.random.normal(k_cw, (CONV_CH, 1, KH, EMB_DIM),
                                      dtype=jnp.float32)
    conv_b = 0.05 * jax.random.normal(k_cb, (CONV_CH,), dtype=jnp.float32)
    fc_w = 0.05 * jax.random.normal(k_fw, (output_size, CONV_CH),
                                    dtype=jnp.float32)
    fc_b = 0.05 * jax.random.normal(k_fb, (output_size,), dtype=jnp.float32)

    forward = jax.jit(my_cnn_forward)
    out = forward(tokens, emb_table, conv_w, conv_b, fc_w, fc_b)
    out = jax.block_until_ready(out)

    assert out.shape == (B, output_size)
    # softmax rows sum to 1
    assert bool(jnp.allclose(jnp.sum(out, axis=1), 1.0, atol=1e-5))
    # matches the f32 reference within bf16-conv tolerance
    ref = _reference_forward(tokens, emb_table, conv_w, conv_b, fc_w, fc_b)
    assert bool(jnp.allclose(out, ref, atol=1e-2)), float(jnp.max(jnp.abs(out - ref)))
    print("KERNEL_OK")
</pallas_src>

<mosaic_0001>
module attributes {stable_mosaic.version = 11 : i64} {
  func.func @_cnn_kernel(%arg0: i32, %arg1: memref<16x300xbf16, #tpu.memory_space<vmem>>, %arg2: memref<300x384xbf16, #tpu.memory_space<vmem>>, %arg3: memref<1x128xf32, #tpu.memory_space<vmem>>, %arg4: memref<1x2x128xf32, #tpu.memory_space<vmem>>) attributes {dimension_semantics = [#tpu.dimension_semantics<parallel>], iteration_bounds = array<i64: 1>, scalar_prefetch = 0 : i64, scratch_operands = 0 : i64, tpu.core_type = #tpu.core_type<tc>, window_params = [{transform_indices = @transform_0, window_bounds = array<i64: 16, 300>}, {pipeline_mode = #tpu.pipeline_mode<synchronous>, transform_indices = @transform_1, window_bounds = array<i64: 300, 384>}, {pipeline_mode = #tpu.pipeline_mode<synchronous>, transform_indices = @transform_2, window_bounds = array<i64: 1, 128>}, {transform_indices = @transform_3, window_bounds = array<i64: 1, 2, 128>}]} {
    %c0 = arith.constant 0 : index
    %c0_0 = arith.constant 0 : index
    %0 = vector.load %arg1[%c0, %c0_0] : memref<16x300xbf16, #tpu.memory_space<vmem>>, vector<16x300xbf16>
    %c0_1 = arith.constant 0 : index
    %c0_2 = arith.constant 0 : index
    %1 = vector.load %arg2[%c0_1, %c0_2] : memref<300x384xbf16, #tpu.memory_space<vmem>>, vector<300x384xbf16>
    %cst = arith.constant dense<0.000000e+00> : vector<16x384xf32>
    %2 = tpu.matmul %0, %1, %cst {dimension_numbers = #tpu.dot_dimension_numbers<[1], [0], [0], [1], [0, 0, 1, 1], [], []>} : vector<16x300xbf16>, vector<300x384xbf16>, vector<16x384xf32> -> vector<16x384xf32>
    %3 = vector.extract_strided_slice %2 {offsets = [0, 0], sizes = [16, 128], strides = [1, 1]} : vector<16x384xf32> to vector<16x128xf32>
    %4 = vector.extract_strided_slice %2 {offsets = [0, 128], sizes = [16, 128], strides = [1, 1]} : vector<16x384xf32> to vector<16x128xf32>
    %5 = vector.extract_strided_slice %2 {offsets = [0, 256], sizes = [16, 128], strides = [1, 1]} : vector<16x384xf32> to vector<16x128xf32>
    %c1_i32 = arith.constant 1 : i32
    %6 = tpu.dynamic_rotate %3 by %c1_i32 dim 0 : vector<16x128xf32>, i32 -> vector<16x128xf32>
    %c15_i32 = arith.constant 15 : i32
    %7 = tpu.dynamic_rotate %5 by %c15_i32 dim 0 : vector<16x128xf32>, i32 -> vector<16x128xf32>
    %8 = vector.shape_cast %4 : vector<16x128xf32> to vector<2x8x128xf32>
    %9 = vector.shape_cast %6 : vector<16x128xf32> to vector<2x8x128xf32>
    %10 = vector.shape_cast %7 : vector<16x128xf32> to vector<2x8x128xf32>
    %11 = tpu.iota {dimensions = array<i32: 1>} : vector<2x8x128xi32>
    %c0_3 = arith.constant 0 : index
    %c0_4 = arith.constant 0 : index
    %12 = vector.load %arg3[%c0_3, %c0_4] : memref<1x128xf32, #tpu.memory_space<vmem>>, vector<1x128xf32>
    %13 = vector.shape_cast %12 : vector<1x128xf32> to vector<1x1x128xf32>
    %14 = vector.broadcast %13 : vector<1x1x128xf32> to vector<2x8x128xf32>
    %15 = arith.addf %8, %14 : vector<2x8x128xf32>
    %c0_i32 = arith.constant 0 : i32
    %16 = vector.broadcast %c0_i32 : i32 to vector<2x8x128xi32>
    %17 = arith.cmpi eq, %11, %16 : vector<2x8x128xi32>
    %cst_5 = arith.constant 0.000000e+00 : f32
    %18 = vector.broadcast %cst_5 : f32 to vector<2x8x128xf32>
    %19 = arith.select %17, %18, %9 : vector<2x8x128xi1>, vector<2x8x128xf32>
    %20 = arith.addf %15, %19 : vector<2x8x128xf32>
    %c7_i32 = arith.constant 7 : i32
    %21 = vector.broadcast %c7_i32 : i32 to vector<2x8x128xi32>
    %22 = arith.cmpi eq, %11, %21 : vector<2x8x128xi32>
    %cst_6 = arith.constant 0.000000e+00 : f32
    %23 = vector.broadcast %cst_6 : f32 to vector<2x8x128xf32>
    %24 = arith.select %22, %23, %10 : vector<2x8x128xi1>, vector<2x8x128xf32>
    %25 = arith.addf %20, %24 : vector<2x8x128xf32>
    %cst_7 = arith.constant 0.000000e+00 : f32
    %26 = vector.broadcast %cst_7 : f32 to vector<2x8x128xf32>
    %27 = arith.maximumf %25, %26 : vector<2x8x128xf32>
    %cst_8 = arith.constant dense<0xFF800000> : vector<2x128xf32>
    %28 = vector.multi_reduction <maximumf>, %27, %cst_8 [1] : vector<2x8x128xf32> to vector<2x128xf32>
    %c0_9 = arith.constant 0 : index
    %c0_10 = arith.constant 0 : index
    %c0_11 = arith.constant 0 : index
    %29 = vector.load %arg4[%c0_9, %c0_10, %c0_11] : memref<1x2x128xf32, #tpu.memory_space<vmem>>, vector<1x2x128xf32>
    %30 = vector.shape_cast %29 : vector<1x2x128xf32> to vector<2x128xf32>
    %31 = vector.shape_cast %28 : vector<2x128xf32> to vector<1x2x128xf32>
    tpu.vector_store %arg4[%c0_9, %c0_10, %c0_11], %31 {strides = array<i32>} : memref<1x2x128xf32, #tpu.memory_space<vmem>>, vector<1x2x128xf32>,
    return
  }
  func.func @transform_0(%arg0: i32) -> (i32, i32) {
    %c0_i32 = arith.constant 0 : i32
    %c0_i32_0 = arith.constant 0 : i32
    return %arg0, %c0_i32 : i32, i32
  }
  func.func @transform_1(%arg0: i32) -> (i32, i32) {
    %c0_i32 = arith.constant 0 : i32
    %c0_i32_0 = arith.constant 0 : i32
    %c0_i32_1 = arith.constant 0 : i32
    return %c0_i32, %c0_i32_0 : i32, i32
  }
  func.func @transform_2(%arg0: i32) -> (i32, i32) {
    %c0_i32 = arith.constant 0 : i32
    %c0_i32_0 = arith.constant 0 : i32
    %c0_i32_1 = arith.constant 0 : i32
    return %c0_i32, %c0_i32_0 : i32, i32
  }
  func.func @transform_3(%arg0: i32) -> (i32, i32, i32) {
    %c0_i32 = arith.constant 0 : i32
    %c0_i32_0 = arith.constant 0 : i32
    %c0_i32_1 = arith.constant 0 : i32
    return %arg0, %c0_i32, %c0_i32_0 : i32, i32, i32
  }
}

</mosaic_0001>

<bundles_post_ra>
// kernel: my_cnn_forward.1
= control target key start
LH: loop header
LB: loop body
LE: loop exit
PB: predicated region body
PF: predicated region fallthrough
CT: control target
= control target key end

     0   :  { %v835_v1 = vmov 0   ;;  %vm415_vm0 = vcmask 1045504   ;;  %vm411_vm1 = vcmask 359424   ;;  %v836_v52 = vmov 0.0   ;;  %s1053_s1 = inlined_call_operand.vmem [shape: bf16[300,384], index: 1, kind: input, shape index: {}]   ;;  %s1054_s0 = inlined_call_operand.vmem [shape: bf16[16,300], index: 0, kind: input, shape index: {}]   ;;  %s1055_s2 = inlined_call_operand.vmem [shape: f32[1,128], index: 2, kind: input, shape index: {}]   ;;  %s1056_s3 = inlined_call_operand.vmem [shape: f32[1,2,128], index: 3, kind: output, shape index: {}]  }
   0x1   :  { %v755_v0 = vld [vmem:[%s1053_s1 + $0x4] ss:$12 sps:$4 sm:$0xff]   ;;  %500 = vmatprep.mubr.bf16.mxu1 %v835_v1  ;;  %v759_v3 = vld [vmem:[%s1053_s1] ss:$12 sps:$4 sm:$0xff]   ;;  %v761_v5 = vld [vmem:[%s1053_s1 + $0x1c] ss:$12 sps:$4 sm:$0xff]  }
   0x2   :  { %v757_v2 = vld [vmem:[%s1053_s1 + $0x184] ss:$12 sps:$4 sm:$0xff]   ;;  %425 = vmatprep.subr.bf16.mxu0 %v755_v0  ;;  %v760_v4 = vld [vmem:[%s1053_s1 + $0x180] ss:$12 sps:$4 sm:$0xff]   ;;  %v763_v6 = vld [vmem:[%s1053_s1 + $0x19c] ss:$12 sps:$4 sm:$0xff]  }
   0x3   :  { %468 = vmatprep.subr.bf16.mxu1 %v757_v2  ;;  %426 = vmatpush1.bf16.msra.mxu0 %v759_v3  ;;  %v765_v7 = vld [vmem:[%s1053_s1 + $0x18] ss:$12 sps:$4 sm:$0xff]   ;;  %v767_v9 = vld [vmem:[%s1053_s1 + $0x34] ss:$12 sps:$4 sm:$0xff]   ;;  %v771_v11 = vld [vmem:[%s1053_s1 + $0x30] ss:$12 sps:$4 sm:$0xff]  }
   0x4   :  { %469 = vmatpush1.bf16.msra.mxu1 %v760_v4  ;;  %427 = vmatprep.subr.bf16.mxu0 %v761_v5  ;;  %v766_v8 = vld [vmem:[%s1053_s1 + $0x198] ss:$12 sps:$4 sm:$0xff]   ;;  %v769_v10 = vld [vmem:[%s1053_s1 + $0x1b4] ss:$12 sps:$4 sm:$0x3f]   ;;  %vm837_vm2 = vmmov 0  }
   0x5   :  { %470 = vmatprep.subr.bf16.mxu1 %v763_v6  ;;  %v772_v12 = vld [vmem:[%s1053_s1 + $0x1b0] ss:$12 sps:$4 sm:$0x3f]   ;;  %v773_v13 = vld [vmem:[%s1053_s1 + $0x4c] ss:$12 sps:$4 sm:$0xff]   ;;  %vm640_vm7 = vcmask 1041409  }
   0x6   :  { %v775_v14 = vld [vmem:[%s1053_s1 + $0xc8] ss:$12 sps:$4 sm:$0xff]   ;;  %v417_v15 = vsel %vm415_vm0, %v772_v12, 0  ;;  %v779_v19 = vld [vmem:[%s1053_s1 + $0x64] ss:$12 sps:$4 sm:$0xff]  }
   0x7   :  { %428 = vmatpush1.bf16.msra.mxu0 %v765_v7  ;;  %v776_v16 = vld [vmem:[%s1053_s1 + $0x48] ss:$12 sps:$4 sm:$0xff]   ;;  %v781_v20 = vld [vmem:[%s1053_s1 + $0xe0] ss:$12 sps:$4 sm:$0xff]   ;;  %v786_v24 = vld [vmem:[%s1053_s1 + $0xf8] ss:$12 sps:$4 sm:$0xff]  }
   0x8   :  { %471 = vmatpush1.bf16.msra.mxu1 %v766_v8  ;;  %429 = vmatprep.subr.bf16.mxu0 %v767_v9  ;;  %v908_v17 = vld [vmem:[%s1054_s0 + $0x8] ss:$12 sps:$4 sm:$0xff]   ;;  %v782_v21 = vld [vmem:[%s1053_s1 + $0x60] ss:$12 sps:$4 sm:$0xff]   ;;  %v787_v25 = vld [vmem:[%s1053_s1 + $0x78] ss:$12 sps:$4 sm:$0xff]  }
   0x9   :  { %708 = vmatprep.subr.msk.bf16.mxu1 %vm415_vm0, %v769_v10  ;;  %v778_v18 = vld [vmem:[%s1053_s1 + $0x8] ss:$12 sps:$4 sm:$0xff]   ;;  %v783_v22 = vld [vmem:[%s1053_s1 + $0x20] ss:$12 sps:$4 sm:$0xff]   ;;  %v788_v26 = vld [vmem:[%s1053_s1 + $0x38] ss:$12 sps:$4 sm:$0xff]   ;;  %v595_v10 = vlaneseq }
   0xa   :  { %v784_v23 = vld [vmem:[%s1053_s1 + $0x7c] ss:$12 sps:$4 sm:$0xff]   ;;  %v789_v27 = vld [vmem:[%s1053_s1 + $0x94] ss:$12 sps:$4 sm:$0xff]   ;;  %v794_v31 = vld [vmem:[%s1053_s1 + $0xac] ss:$12 sps:$4 sm:$0xff]  }
   0xb   :  { %430 = vmatpush1.bf16.msra.mxu0 %v771_v11  ;;  %v791_v28 = vld [vmem:[%s1053_s1 + $0x110] ss:$12 sps:$4 sm:$0xff]   ;;  %v796_v32 = vld [vmem:[%s1053_s1 + $0x128] ss:$12 sps:$4 sm:$0xff]   ;;  %v801_v36 = vld [vmem:[%s1053_s1 + $0x140] ss:$12 sps:$4 sm:$0xff]  }
   0xc   :  { %473 = vmatpush1.bf16.msra.mxu1 %v417_v15  ;;  %431 = vmatprep.subr.bf16.mxu0 %v773_v13  ;;  %v792_v29 = vld [vmem:[%s1053_s1 + $0x90] ss:$12 sps:$4 sm:$0xff]   ;;  %v797_v33 = vld [vmem:[%s1053_s1 + $0xa8] ss:$12 sps:$4 sm:$0xff]   ;;  %v802_v37 = vld [vmem:[%s1053_s1 + $0xc0] ss:$12 sps:$4 sm:$0xff]  }
   0xd   :  { %712 = vmatprep.subr.bf16.mxu1 %v775_v14  ;;  %v793_v30 = vld [vmem:[%s1053_s1 + $0x50] ss:$12 sps:$4 sm:$0xff]   ;;  %v798_v34 = vld [vmem:[%s1053_s1 + $0x68] ss:$12 sps:$4 sm:$0xff]   ;;  %v803_v38 = vld [vmem:[%s1053_s1 + $0x80] ss:$12 sps:$4 sm:$0xff]  }
   0xe   :  { %v799_v35 = vld [vmem:[%s1053_s1 + $0xc4] ss:$12 sps:$4 sm:$0xff]   ;;  %v804_v39 = vld [vmem:[%s1053_s1 + $0xdc] ss:$12 sps:$4 sm:$0xff]   ;;  %v809_v43 = vld [vmem:[%s1053_s1 + $0xf4] ss:$12 sps:$4 sm:$0xff]  }
   0xf   :  { %709 = vmatmul.mubr.msk.bf16.vlgmr.msra.gmra.mrb[0].mxu1 %vm411_vm1, %v908_v17  ;;  %432 = vmatpush1.bf16.msra.mxu0 %v776_v16  ;;  %v806_v40 = vld [vmem:[%s1053_s1 + $0x158] ss:$12 sps:$4 sm:$0xff]   ;;  %v811_v44 = vld [vmem:[%s1053_s1 + $0x170] ss:$12 sps:$4 sm:$0xff]   ;;  %v816_v49 = vld [vmem:[%s1054_s0] ss:$12 sps:$4 sm:$0xff]  }
  0x10   :  { %713 = vmatpush3.bf16.msra.mxu1 %v778_v18  ;;  %433 = vmatprep.subr.bf16.mxu0 %v779_v19  ;;  %v807_v41 = vld [vmem:[%s1053_s1 + $0xd8] ss:$12 sps:$4 sm:$0xff]   ;;  %v812_v46 = vld [vmem:[%s1053_s1 + $0xf0] ss:$12 sps:$4 sm:$0xff]   ;;  %v819_v50 = vld [vmem:[%s1053_s1 + $0x108] ss:$12 sps:$4 sm:$0xff]  }
  0x11   :  { %714 = vmatprep.subr.bf16.mxu1 %v781_v20  ;;  %v808_v42 = vld [vmem:[%s1053_s1 + $0x98] ss:$12 sps:$4 sm:$0xff]   ;;  %v813_v47 = vld [vmem:[%s1053_s1 + $0xb0] ss:$12 sps:$4 sm:$0xff]   ;;  %v820_v51 = vld [vmem:[%s1053_s1 + $0x188] ss:$12 sps:$4 sm:$0xff]  }
  0x12   :  { %v818_v45 = vld [vmem:[%s1054_s0 + $0x4] ss:$12 sps:$4 sm:$0xff]   ;;  %v814_v48 = vld [vmem:[%s1053_s1 + $0x10c] ss:$12 sps:$4 sm:$0xff]   ;;  %v825_v56 = vld [vmem:[%s1053_s1 + $0x13c] ss:$12 sps:$4 sm:$0xff]  }
  0x13   :  { %434 = vmatpush1.bf16.msra.mxu0 %v782_v21  ;;  %543 = vmatprep.mubr.bf16.mxu1 %v818_v45  ;;  %v821_v53 = vld [vmem:[%s1053_s1 + $0x124] ss:$12 sps:$4 sm:$0xff]   ;;  %v823_v54 = vld [vmem:[%s1053_s1 + $0x120] ss:$12 sps:$4 sm:$0xff]   ;;  %v834_v63 = vld [vmem:[%s1053_s1 + $0x168] ss:$12 sps:$4 sm:$0xff]  }
  0x14   :  { %715 = vmatpush3.bf16.msra.mxu1 %v783_v22  ;;  %435 = vmatprep.subr.bf16.mxu0 %v784_v23  ;;  %v824_v55 = vld [vmem:[%s1053_s1 + $0x1a0] ss:$12 sps:$4 sm:$0xff]   ;;  %v828_v57 = vld [vmem:[%s1053_s1 + $0x1b8] ss:$12 sps:$4 sm:$0x3f]   ;;  %v596_v12 = vshrl.u32 %v595_v10, 7 }
  0x15   :  { %716 = vmatprep.subr.bf16.mxu1 %v786_v24  ;;  %457 = vmatprep.mubr.bf16.mxu0 %v818_v45  ;;  %v827_v58 = vld [vmem:[%s1053_s1 + $0x138] ss:$12 sps:$4 sm:$0xff]   ;;  %v423_v59 = vsel %vm415_vm0, %v828_v57, 0  ;;  %v829_v60 = vld [vmem:[%s1053_s1 + $0x154] ss:$12 sps:$4 sm:$0xff]  }
  0x16   :  { %v831_v61 = vld [vmem:[%s1053_s1 + $0x150] ss:$12 sps:$4 sm:$0xff]   ;;  %v832_v62 = vld [vmem:[%s1053_s1 + $0x16c] ss:$12 sps:$4 sm:$0xff]   ;;  %vm602_vm3 = vcmp.lt.s32.totalorder %v596_v12, 7  ;;  %vm597_vm4 = vcmp.lt.s32.totalorder %v596_v12, 1 }
  0x17   :  { %436 = vmatpush1.bf16.msra.mxu0 %v787_v25  ;;  %vm614_vm5 = vcmp.eq.s32.totalorder %v596_v12, 0  ;;  %vm619_vm6 = vcmp.eq.s32.totalorder %v596_v12, 7 }
  0x18   :  { %717 = vmatpush3.bf16.msra.mxu1 %v788_v26  ;;  %437 = vmatprep.subr.bf16.mxu0 %v789_v27 }
  0x19   :  { %718 = vmatprep.subr.bf16.mxu1 %v791_v28 }
  0x1b   :  { %438 = vmatpush1.bf16.msra.mxu0 %v792_v29  ;;  %v711_v29 = vld [vmem:[%s1055_s2] ss:$0 sm:$0xff] }
  0x1c   :  { %719 = vmatpush3.bf16.msra.mxu1 %v793_v30  ;;  %439 = vmatprep.subr.bf16.mxu0 %v794_v31 }
  0x1d   :  { %720 = vmatprep.subr.bf16.mxu1 %v796_v32 }
  0x1f   :  { %440 = vmatpush1.bf16.msra.mxu0 %v797_v33 }
  0x20   :  { %721 = vmatpush3.bf16.msra.mxu1 %v798_v34  ;;  %441 = vmatprep.subr.bf16.mxu0 %v799_v35 }
  0x21   :  { %722 = vmatprep.subr.bf16.mxu1 %v801_v36 }
  0x23   :  { %442 = vmatpush1.bf16.msra.mxu0 %v802_v37 }
  0x24   :  { %723 = vmatpush3.bf16.msra.mxu1 %v803_v38  ;;  %443 = vmatprep.subr.bf16.mxu0 %v804_v39 }
  0x25   :  { %724 = vmatprep.subr.bf16.mxu1 %v806_v40 }
  0x27   :  { %444 = vmatpush1.bf16.msra.mxu0 %v807_v41 }
  0x28   :  { %725 = vmatpush3.bf16.msra.mxu1 %v808_v42  ;;  %445 = vmatprep.subr.bf16.mxu0 %v809_v43 }
  0x29   :  { %726 = vmatprep.subr.bf16.mxu1 %v811_v44 }
  0x2b   :  { %446 = vmatpush1.bf16.msra.mxu0 %v812_v46 }
  0x2c   :  { %727 = vmatpush3.bf16.msra.mxu1 %v813_v47  ;;  %447 = vmatprep.subr.bf16.mxu0 %v814_v48 }
  0x2d   :  { %738 = vmatprep.subr.bf16.mxu1 %v836_v52 }
  0x2f   :  { %544 = vmatmul.mubr.bf16.vlgmr.msra.gmra.mrb[4].mxu1 %v816_v49  ;;  %448 = vmatpush1.bf16.msra.mxu0 %v819_v50 }
  0x30   :  { %739 = vmatpush3.bf16.msra.mxu1 %v820_v51  ;;  %449 = vmatprep.subr.bf16.mxu0 %v821_v53 }
  0x31   :  { %740 = vmatprep.subr.bf16.mxu1 %v836_v52  ;;  %744 = vmatprep.mubr.msk.bf16.mxu1 %vm837_vm2, %v836_v52 }
  0x33   :  { %450 = vmatpush1.bf16.msra.mxu0 %v823_v54 }
  0x34   :  { %741 = vmatpush3.bf16.msra.mxu1 %v824_v55  ;;  %451 = vmatprep.subr.bf16.mxu0 %v825_v56 }
  0x35   :  { %742 = vmatprep.subr.bf16.mxu1 %v836_v52 }
  0x37   :  { %452 = vmatpush1.bf16.msra.mxu0 %v827_v58 }
  0x38   :  { %743 = vmatpush3.bf16.msra.mxu1 %v423_v59  ;;  %453 = vmatprep.subr.bf16.mxu0 %v829_v60 }
  0x3b   :  { %745 = vmatmul.mubr.msk.bf16.vlgmr.msra.gmra.mrb[8].mxu1 %vm411_vm1, %v908_v17  ;;  %454 = vmatpush1.bf16.msra.mxu0 %v831_v61 }
  0x3c   :  { %455 = vmatprep.subr.bf16.mxu0 %v832_v62 }
  0x3f   :  { %456 = vmatpush1.bf16.msra.mxu0 %v834_v63 }
  0x42   :  { %458 = vmatmul.mubr.bf16.vlgmr.msra.gmra.mrb[0].mxu0 %v816_v49 }
  0xe2   :  { %v502_v0 = vpop.f32.mrb[0].mxu1 }
  0xe3   :  { %v504_v1 = vpop.f32.mrb[1].mxu1 }
  0xe4   :  { %v506_v2 = vpop.f32.mrb[2].mxu1 }
  0xe5   :  { %v508_v3 = vpop.f32.mrb[3].mxu1 }
 0x102   :  { %v728_v4 = vpop.f32.mrb[4].mxu1 }
 0x103   :  { %v729_v5 = vpop.f32.mrb[5].mxu1 }
 0x104   :  { %v730_v6 = vadd.f32 %v729_v5, %v728_v4  ;;  %v731_v7 = vpop.f32.mrb[6].mxu1 }
 0x105   :  { %v732_v8 = vpop.f32.mrb[7].mxu1 }
 0x106   :  { %v733_v9 = vadd.f32 %v732_v8, %v731_v7 }
 0x10e   :  { %v586_v11 = vpop.f32.mrb[8].mxu1 }
 0x10f   :  { %v587_v13 = vadd.f32 %v730_v6, %v586_v11  ;;  %v746_v14 = vpop.f32.mrb[9].mxu1 }
 0x110   :  { %v589_v15 = vpop.f32.mrb[10].mxu1 }
 0x111   :  { %v600_v16 = vrot.slane %v587_v13, 1  ;;  %v590_v17 = vadd.f32 %v733_v9, %v589_v15  ;;  %v747_v18 = vpop.f32.mrb[11].mxu1 }
 0x113   :  { %v601_v19 = vrot.slane %v590_v17, 1 }
 0x115   :  { %v603_v20 = vsel %vm602_vm3, %v600_v16, %v601_v19  ;;  %v604_v21 = vsel %vm602_vm3, %v601_v19, %v600_v16  ;;  %v459_v22 = vpop.f32.mrb[0].mxu0 }
 0x116   :  { %v503_v23 = vadd.f32 %v502_v0, %v459_v22  ;;  %v461_v24 = vpop.f32.mrb[1].mxu0  ;;  %v620_v41 = vsel %vm619_vm6, 0.0, %v603_v20  ;;  %v621_v42 = vsel %vm619_vm6, 0.0, %v604_v21 }
 0x117   :  { %v505_v25 = vadd.f32 %v504_v1, %v461_v24  ;;  %v463_v26 = vpop.f32.mrb[2].mxu0 }
 0x118   :  { %v507_v27 = vadd.f32 %v506_v2, %v463_v26  ;;  %v465_v28 = vpop.f32.mrb[3].mxu0  ;;  %v593_v31 = vrot.slane %v503_v23, 7 }
 0x119   :  { %v509_v30 = vadd.f32 %v508_v3, %v465_v28  ;;  %v612_v34 = vadd.f32 %v711_v29, %v505_v25 }
 0x11a   :  { %v594_v32 = vrot.slane %v507_v27, 7 }
 0x11b   :  { %v613_v33 = vadd.f32 %v711_v29, %v509_v30 }
 0x11c   :  { %v598_v35 = vsel %vm597_vm4, %v593_v31, %v594_v32  ;;  %v599_v36 = vsel %vm597_vm4, %v594_v32, %v593_v31 }
 0x11d   :  { %v615_v37 = vsel %vm614_vm5, 0.0, %v599_v36  ;;  %v616_v38 = vsel %vm614_vm5, 0.0, %v598_v35 }
 0x11e   :  { %v617_v39 = vadd.f32 %v615_v37, %v612_v34  ;;  %v618_v40 = vadd.f32 %v616_v38, %v613_v33 }
 0x120   :  { %v622_v43 = vadd.f32 %v620_v41, %v617_v39  ;;  %v623_v44 = vadd.f32 %v621_v42, %v618_v40 }
 0x122   :  { %v624_v45 = vmax.f32 %v622_v43, 0.0  ;;  %v625_v46 = vmax.f32 %v623_v44, 0.0 }
 0x124   :  { %v626_v47 = vrot.slane %v624_v45, 4  ;;  %v632_v48 = vrot.slane %v625_v46, 4 }
 0x126   :  { %v627_v49 = vmax.f32 %v624_v45, %v626_v47  ;;  %v633_v50 = vmax.f32 %v625_v46, %v632_v48 }
 0x128   :  { %v628_v51 = vrot.slane %v627_v49, 2  ;;  %v634_v52 = vrot.slane %v633_v50, 2 }
 0x12a   :  { %v629_v53 = vmax.f32 %v627_v49, %v628_v51  ;;  %v635_v54 = vmax.f32 %v633_v50, %v634_v52 }
 0x12c   :  { %v630_v55 = vrot.slane %v629_v53, 1  ;;  %v636_v56 = vrot.slane %v635_v54, 1 }
 0x12e   :  { %v631_v57 = vmax.f32 %v629_v53, %v630_v55  ;;  %v637_v58 = vmax.f32 %v635_v54, %v636_v56 }
 0x130   :  { %v641_v59 = vsel %vm640_vm7, %v637_v58, %v631_v57 }
 0x131   :  { %643 = vst [vmem:[%s1056_s3] sm:$0x3] %v641_v59 }

</bundles_post_ra>
